<compile_context>
chip_gen: v6e
topology: v6e:2x2x1
jax: 0.10.0
libtpu: 0.0.40
codegen_flags: <defaults>
</compile_context>

<pallas_src>
import functools

import jax
import jax.numpy as jnp
from jax import lax
from jax.experimental import pallas as pl
from jax.experimental.pallas import tpu as pltpu


# Keep the per-step tile footprint comfortably under v7x's 64 MiB physical VMEM
# (and the 32 MiB scoped default on v6e/v7x).
_VMEM_TILE_BUDGET = 28 * 1024 * 1024


def _pick_q_block(Sq, Sk, Dk, Dv, itemsize, mask_itemsize):
    """Largest q-tile (rows) whose double-buffered footprint fits the VMEM budget."""
    # K/V blocks are resident per (batch, head) and double-buffered by the pipeline.
    kv_bytes = 2 * Sk * (Dk + Dv) * itemsize
    # Per-q-row cost: q/ctx/attn output tiles (double-buffered), int8 mask tile,
    # plus the f32 score/softmax intermediates.
    per_row = (2 * (Dk + Dv + Sk) * itemsize
               + 2 * Sk * mask_itemsize
               + 2 * Sk * 4)
    avail = max(_VMEM_TILE_BUDGET - kv_bytes, 64 * per_row)
    max_rows = max(32, avail // per_row)
    if Sq <= max_rows:
        return Sq                      # full extent: always layout-legal
    for cand in (1024, 512, 256, 128, 64, 32):   # 32-multiples keep int8 mask tiling legal
        if cand <= max_rows and Sq % cand == 0:
            return cand
    # TODO(synk): ragged Sq with very long Sk may exceed the budget at full extent.
    return Sq


def _softmax_rows(score):
    m = jnp.max(score, axis=-1, keepdims=True)
    e = jnp.exp(score - m)
    l = jnp.sum(e, axis=-1, keepdims=True)
    # EUP approximate reciprocal (otherwise-idle slot) + one Newton step on the
    # tiny (tq, 1) vector to recover full f32 accuracy.
    r = pl.reciprocal(l, approx=True)
    r = r * (2.0 - l * r)
    return e * r


def _attn_compute(q, k, v, mask, ctx_ref, attn_ref, scale):
    # Fold 1/sqrt(d_k) into q; keep MXU operands in the input dtype.
    qs = q * scale                                            # (tq, Dk)
    score = lax.dot_general(                                  # (tq, Sk) f32
        qs, k, (((1,), (1,)), ((), ())),
        preferred_element_type=jnp.float32)
    if mask is not None:
        # PyTorch: score.masked_fill(mask == 0, 1e-09)  (applied to the scores).
        score = jnp.where(mask != 0, score, jnp.float32(1e-9))
    attn = _softmax_rows(score)                               # (tq, Sk) f32
    attn_ref[...] = attn.astype(attn_ref.dtype)
    ctx = jnp.dot(attn.astype(v.dtype), v,                    # (tq, Dv) f32 accumulate
                  preferred_element_type=jnp.float32)
    ctx_ref[...] = ctx.astype(ctx_ref.dtype)


def _sdpa_kernel_nomask(q_ref, k_ref, v_ref, ctx_ref, attn_ref, *, scale):
    _attn_compute(q_ref[...], k_ref[...], v_ref[...], None, ctx_ref, attn_ref, scale)


def _sdpa_kernel_mask(mask_ref, q_ref, k_ref, v_ref, ctx_ref, attn_ref, *, scale):
    _attn_compute(q_ref[...], k_ref[...], v_ref[...], mask_ref[...],
                  ctx_ref, attn_ref, scale)


def scaled_dot_product_attention(q, k, v, mask=None, *, q_block_size=None):
    """q: (B, H, Sq, Dk), k: (B, H, Sk, Dk), v: (B, H, Sk, Dv),
    mask: optional (B, 1, Sq, Sk) (nonzero = keep).  Returns (context, attention)."""
    B, H, Sq, Dk = q.shape
    Sk = k.shape[2]
    Dv = v.shape[3]

    scale = 1.0 / (float(Dk) ** 0.5)
    itemsize = jnp.dtype(q.dtype).itemsize
    mask_itemsize = 1 if mask is not None else 0

    tq = q_block_size if q_block_size is not None else _pick_q_block(
        Sq, Sk, Dk, Dv, itemsize, mask_itemsize)
    if Sq % tq != 0:
        tq = Sq
    n_q = Sq // tq

    out_shape = (
        jax.ShapeDtypeStruct((B, H, Sq, Dv), q.dtype),   # context
        jax.ShapeDtypeStruct((B, H, Sq, Sk), q.dtype),   # attention (input dtype, not f32)
    )

    # q/ctx/attn tiles move with the q-block; k/v index only on (b, h) so they
    # stay resident in VMEM across all q tiles of a head.
    q_spec = pl.BlockSpec((None, None, tq, Dk), lambda b, h, qi: (b, h, qi, 0))
    k_spec = pl.BlockSpec((None, None, Sk, Dk), lambda b, h, qi: (b, h, 0, 0))
    v_spec = pl.BlockSpec((None, None, Sk, Dv), lambda b, h, qi: (b, h, 0, 0))
    ctx_spec = pl.BlockSpec((None, None, tq, Dv), lambda b, h, qi: (b, h, qi, 0))
    attn_spec = pl.BlockSpec((None, None, tq, Sk), lambda b, h, qi: (b, h, qi, 0))

    compiler_params = pltpu.CompilerParams(
        dimension_semantics=("parallel", "parallel", "parallel"),
        vmem_limit_bytes=64 * 1024 * 1024,   # lift v5e's 16 MiB scoped default
    )

    if mask is None:
        kernel = functools.partial(_sdpa_kernel_nomask, scale=scale)
        return pl.pallas_call(
            kernel,
            out_shape=out_shape,
            grid=(B, H, n_q),
            in_specs=[q_spec, k_spec, v_spec],
            out_specs=(ctx_spec, attn_spec),
            compiler_params=compiler_params,
        )(q, k, v)
    else:
        # int8 mask (4x less traffic than int32), broadcast over heads via index_map.
        mask_i8 = mask.astype(jnp.int8)
        mask_spec = pl.BlockSpec((None, None, tq, Sk), lambda b, h, qi: (b, 0, qi, 0))
        kernel = functools.partial(_sdpa_kernel_mask, scale=scale)
        return pl.pallas_call(
            kernel,
            out_shape=out_shape,
            grid=(B, H, n_q),
            in_specs=[mask_spec, q_spec, k_spec, v_spec],
            out_specs=(ctx_spec, attn_spec),
            compiler_params=compiler_params,
        )(mask_i8, q, k, v)


def _reference(q, k, v, mask=None):
    d_k = k.shape[-1]
    score = jnp.einsum("bhqd,bhkd->bhqk", q, k) / (d_k ** 0.5)
    if mask is not None:
        score = jnp.where(mask == 0, 1e-9, score)
    attn = jax.nn.softmax(score, axis=-1)
    ctx = jnp.einsum("bhqk,bhkd->bhqd", attn, v)
    return ctx, attn


if __name__ == "__main__":
    key = jax.random.PRNGKey(0)

    # --- Case 1 & 2: small module-shaped inputs, masked and unmasked -------------
    B, H, Sq, Sk, Dk, Dv = 2, 4, 8, 8, 16, 16
    kq, kk, kv, km = jax.random.split(key, 4)
    q = jax.random.normal(kq, (B, H, Sq, Dk), dtype=jnp.float32)
    k = jax.random.normal(kk, (B, H, Sk, Dk), dtype=jnp.float32)
    v = jax.random.normal(kv, (B, H, Sk, Dv), dtype=jnp.float32)

    mask = (jnp.arange(Sk)[None, :] <= jnp.arange(Sq)[:, None])     # causal-style
    mask = jnp.broadcast_to(mask, (B, 1, Sq, Sk))

    ctx, attn = scaled_dot_product_attention(q, k, v, mask)
    jax.block_until_ready((ctx, attn))
    ctx_ref, attn_ref = _reference(q, k, v, mask)

    ctx2, attn2 = scaled_dot_product_attention(q, k, v)
    jax.block_until_ready((ctx2, attn2))
    ctx2_ref, attn2_ref = _reference(q, k, v)

    assert jnp.allclose(ctx, ctx_ref, atol=1e-4, rtol=1e-4)
    assert jnp.allclose(attn, attn_ref, atol=1e-4, rtol=1e-4)
    assert jnp.allclose(ctx2, ctx2_ref, atol=1e-4, rtol=1e-4)
    assert jnp.allclose(attn2, attn2_ref, atol=1e-4, rtol=1e-4)

    # --- Case 3: exercise the q-tiling path (tq < Sq), masked --------------------
    B3, H3, Sq3, Sk3, Dk3, Dv3 = 1, 2, 64, 32, 32, 32
    k3a, k3b, k3c, k3d = jax.random.split(jax.random.PRNGKey(1), 4)
    q3 = jax.random.normal(k3a, (B3, H3, Sq3, Dk3), dtype=jnp.float32)
    k3 = jax.random.normal(k3b, (B3, H3, Sk3, Dk3), dtype=jnp.float32)
    v3 = jax.random.normal(k3c, (B3, H3, Sk3, Dv3), dtype=jnp.float32)
    mask3 = (jax.random.uniform(k3d, (B3, 1, Sq3, Sk3)) > 0.3)

    ctx3, attn3 = scaled_dot_product_attention(q3, k3, v3, mask3, q_block_size=32)
    jax.block_until_ready((ctx3, attn3))
    ctx3_ref, attn3_ref = _reference(q3, k3, v3, mask3)

    assert jnp.allclose(ctx3, ctx3_ref, atol=1e-4, rtol=1e-4)
    assert jnp.allclose(attn3, attn3_ref, atol=1e-4, rtol=1e-4)

    print("KERNEL_OK")
</pallas_src>

<mosaic_0001>
module attributes {stable_mosaic.version = 11 : i64} {
  func.func @_sdpa_kernel_mask(%arg0: i32, %arg1: i32, %arg2: i32, %arg3: memref<1x1x8x8xi8, #tpu.memory_space<vmem>>, %arg4: memref<1x1x8x16xf32, #tpu.memory_space<vmem>>, %arg5: memref<1x1x8x16xf32, #tpu.memory_space<vmem>>, %arg6: memref<1x1x8x16xf32, #tpu.memory_space<vmem>>, %arg7: memref<1x1x8x16xf32, #tpu.memory_space<vmem>>, %arg8: memref<1x1x8x8xf32, #tpu.memory_space<vmem>>) attributes {dimension_semantics = [#tpu.dimension_semantics<parallel>, #tpu.dimension_semantics<parallel>, #tpu.dimension_semantics<parallel>], iteration_bounds = array<i64: 2, 4, 1>, scalar_prefetch = 0 : i64, scratch_operands = 0 : i64, tpu.core_type = #tpu.core_type<tc>, window_params = [{transform_indices = @transform_0, window_bounds = array<i64: 1, 1, 8, 8>}, {transform_indices = @transform_1, window_bounds = array<i64: 1, 1, 8, 16>}, {transform_indices = @transform_2, window_bounds = array<i64: 1, 1, 8, 16>}, {transform_indices = @transform_3, window_bounds = array<i64: 1, 1, 8, 16>}, {transform_indices = @transform_4, window_bounds = array<i64: 1, 1, 8, 16>}, {transform_indices = @transform_5, window_bounds = array<i64: 1, 1, 8, 8>}]} {
    %c0 = arith.constant 0 : index
    %c0_0 = arith.constant 0 : index
    %c0_1 = arith.constant 0 : index
    %c0_2 = arith.constant 0 : index
    %0 = vector.load %arg4[%c0, %c0_0, %c0_1, %c0_2] : memref<1x1x8x16xf32, #tpu.memory_space<vmem>>, vector<1x1x8x16xf32>
    %1 = vector.shape_cast %0 : vector<1x1x8x16xf32> to vector<8x16xf32>
    %c0_3 = arith.constant 0 : index
    %c0_4 = arith.constant 0 : index
    %c0_5 = arith.constant 0 : index
    %c0_6 = arith.constant 0 : index
    %2 = vector.load %arg5[%c0_3, %c0_4, %c0_5, %c0_6] : memref<1x1x8x16xf32, #tpu.memory_space<vmem>>, vector<1x1x8x16xf32>
    %3 = vector.shape_cast %2 : vector<1x1x8x16xf32> to vector<8x16xf32>
    %c0_7 = arith.constant 0 : index
    %c0_8 = arith.constant 0 : index
    %c0_9 = arith.constant 0 : index
    %c0_10 = arith.constant 0 : index
    %4 = vector.load %arg6[%c0_7, %c0_8, %c0_9, %c0_10] : memref<1x1x8x16xf32, #tpu.memory_space<vmem>>, vector<1x1x8x16xf32>
    %5 = vector.shape_cast %4 : vector<1x1x8x16xf32> to vector<8x16xf32>
    %c0_11 = arith.constant 0 : index
    %c0_12 = arith.constant 0 : index
    %c0_13 = arith.constant 0 : index
    %c0_14 = arith.constant 0 : index
    %6 = vector.load %arg3[%c0_11, %c0_12, %c0_13, %c0_14] : memref<1x1x8x8xi8, #tpu.memory_space<vmem>>, vector<1x1x8x8xi8>
    %7 = vector.shape_cast %6 : vector<1x1x8x8xi8> to vector<8x8xi8>
    %cst = arith.constant 2.500000e-01 : f32
    %8 = vector.broadcast %cst : f32 to vector<8x16xf32>
    %9 = arith.mulf %1, %8 : vector<8x16xf32>
    %cst_15 = arith.constant dense<0.000000e+00> : vector<8x8xf32>
    %10 = tpu.matmul %9, %3, %cst_15 {dimension_numbers = #tpu.dot_dimension_numbers<[1], [1], [0], [0], [0, 0, 1, 0], [], []>} : vector<8x16xf32>, vector<8x16xf32>, vector<8x8xf32> -> vector<8x8xf32>
    %c0_i8 = arith.constant 0 : i8
    %11 = vector.broadcast %c0_i8 : i8 to vector<8x8xi8>
    %12 = arith.cmpi ne, %7, %11 : vector<8x8xi8>
    %cst_16 = arith.constant 9.99999971E-10 : f32
    %13 = vector.broadcast %cst_16 : f32 to vector<8x8xf32>
    %14 = arith.select %12, %10, %13 : vector<8x8xi1>, vector<8x8xf32>
    %cst_17 = arith.constant dense<0xFF800000> : vector<8xf32>
    %15 = vector.multi_reduction <maximumf>, %14, %cst_17 [1] : vector<8x8xf32> to vector<8xf32>
    %16 = vector.shape_cast %15 : vector<8xf32> to vector<8x1xf32>
    %17 = vector.broadcast %16 : vector<8x1xf32> to vector<8x8xf32>
    %18 = arith.subf %14, %17 : vector<8x8xf32>
    %19 = math.exp %18 : vector<8x8xf32>
    %cst_18 = arith.constant dense<0.000000e+00> : vector<8xf32>
    %20 = vector.multi_reduction <add>, %19, %cst_18 [1] : vector<8x8xf32> to vector<8xf32>
    %21 = vector.shape_cast %20 : vector<8xf32> to vector<8x1xf32>
    %22 = tpu.reciprocal %21 {approx = true} : vector<8x1xf32> -> vector<8x1xf32>
    %23 = arith.mulf %21, %22 : vector<8x1xf32>
    %cst_19 = arith.constant 2.000000e+00 : f32
    %24 = vector.broadcast %cst_19 : f32 to vector<8x1xf32>
    %25 = arith.subf %24, %23 : vector<8x1xf32>
    %26 = arith.mulf %22, %25 : vector<8x1xf32>
    %27 = vector.broadcast %26 : vector<8x1xf32> to vector<8x8xf32>
    %28 = arith.mulf %19, %27 : vector<8x8xf32>
    %c0_20 = arith.constant 0 : index
    %c0_21 = arith.constant 0 : index
    %c0_22 = arith.constant 0 : index
    %c0_23 = arith.constant 0 : index
    %29 = vector.load %arg8[%c0_20, %c0_21, %c0_22, %c0_23] : memref<1x1x8x8xf32, #tpu.memory_space<vmem>>, vector<1x1x8x8xf32>
    %30 = vector.shape_cast %29 : vector<1x1x8x8xf32> to vector<8x8xf32>
    %31 = vector.shape_cast %28 : vector<8x8xf32> to vector<1x1x8x8xf32>
    tpu.vector_store %arg8[%c0_20, %c0_21, %c0_22, %c0_23], %31 {strides = array<i32>} : memref<1x1x8x8xf32, #tpu.memory_space<vmem>>, vector<1x1x8x8xf32>,
    %cst_24 = arith.constant dense<0.000000e+00> : vector<8x16xf32>
    %32 = tpu.matmul %28, %5, %cst_24 {dimension_numbers = #tpu.dot_dimension_numbers<[1], [0], [0], [1], [0, 0, 1, 1], [], []>} : vector<8x8xf32>, vector<8x16xf32>, vector<8x16xf32> -> vector<8x16xf32>
    %c0_25 = arith.constant 0 : index
    %c0_26 = arith.constant 0 : index
    %c0_27 = arith.constant 0 : index
    %c0_28 = arith.constant 0 : index
    %33 = vector.load %arg7[%c0_25, %c0_26, %c0_27, %c0_28] : memref<1x1x8x16xf32, #tpu.memory_space<vmem>>, vector<1x1x8x16xf32>
    %34 = vector.shape_cast %33 : vector<1x1x8x16xf32> to vector<8x16xf32>
    %35 = vector.shape_cast %32 : vector<8x16xf32> to vector<1x1x8x16xf32>
    tpu.vector_store %arg7[%c0_25, %c0_26, %c0_27, %c0_28], %35 {strides = array<i32>} : memref<1x1x8x16xf32, #tpu.memory_space<vmem>>, vector<1x1x8x16xf32>,
    return
  }
  func.func @transform_0(%arg0: i32, %arg1: i32, %arg2: i32) -> (i32, i32, i32, i32) {
    %c0_i32 = arith.constant 0 : i32
    %c0_i32_0 = arith.constant 0 : i32
    %c0_i32_1 = arith.constant 0 : i32
    return %arg0, %c0_i32, %arg2, %c0_i32_0 : i32, i32, i32, i32
  }
  func.func @transform_1(%arg0: i32, %arg1: i32, %arg2: i32) -> (i32, i32, i32, i32) {
    %c0_i32 = arith.constant 0 : i32
    %c0_i32_0 = arith.constant 0 : i32
    return %arg0, %arg1, %arg2, %c0_i32 : i32, i32, i32, i32
  }
  func.func @transform_2(%arg0: i32, %arg1: i32, %arg2: i32) -> (i32, i32, i32, i32) {
    %c0_i32 = arith.constant 0 : i32
    %c0_i32_0 = arith.constant 0 : i32
    %c0_i32_1 = arith.constant 0 : i32
    return %arg0, %arg1, %c0_i32, %c0_i32_0 : i32, i32, i32, i32
  }
  func.func @transform_3(%arg0: i32, %arg1: i32, %arg2: i32) -> (i32, i32, i32, i32) {
    %c0_i32 = arith.constant 0 : i32
    %c0_i32_0 = arith.constant 0 : i32
    %c0_i32_1 = arith.constant 0 : i32
    return %arg0, %arg1, %c0_i32, %c0_i32_0 : i32, i32, i32, i32
  }
  func.func @transform_4(%arg0: i32, %arg1: i32, %arg2: i32) -> (i32, i32, i32, i32) {
    %c0_i32 = arith.constant 0 : i32
    %c0_i32_0 = arith.constant 0 : i32
    return %arg0, %arg1, %arg2, %c0_i32 : i32, i32, i32, i32
  }
  func.func @transform_5(%arg0: i32, %arg1: i32, %arg2: i32) -> (i32, i32, i32, i32) {
    %c0_i32 = arith.constant 0 : i32
    %c0_i32_0 = arith.constant 0 : i32
    return %arg0, %arg1, %arg2, %c0_i32 : i32, i32, i32, i32
  }
}

</mosaic_0001>

<bundles_post_ra>
// kernel: tpu_custom_call.1
= control target key start
LH: loop header
LB: loop body
LE: loop exit
PB: predicated region body
PF: predicated region fallthrough
CT: control target
= control target key end

     0   :  { %s1639_s0 = inlined_call_operand.hbm [shape: s8[2,1,8,8], index: 0, kind: input, shape index: {}]   ;;  %s1640_s1 = inlined_call_operand.hbm [shape: f32[2,4,8,16], index: 1, kind: input, shape index: {}]   ;;  %s1641_s2 = inlined_call_operand.hbm [shape: f32[2,4,8,16], index: 2, kind: input, shape index: {}]   ;;  %s1642_s3 = inlined_call_operand.hbm [shape: f32[2,4,8,16], index: 3, kind: input, shape index: {}]   ;;  %s1643_s4 = inlined_call_operand.hbm [shape: f32[2,4,8,16], index: 4, kind: output, shape index: {0}]   ;;  %s1644_s5 = inlined_call_operand.hbm [shape: f32[2,4,8,8], index: 5, kind: output, shape index: {1}]  }
   0x1   :  { %1661 = sst [smem:[#allocation27_spill]] %s1640_s1 }
   0x2   :  { %1662 = sst [smem:[#allocation28_spill]] %s1643_s4 }
   0x3   :  { %1663 = sst [smem:[#allocation29_spill]] %s1644_s5 }
   0x4   :  { %11 = vsyncpa [#allocation3], 0 }
   0x5   :  { %13 = vsyncpa [#allocation3 + $0x1], 0 }
   0x6   :  { %14 = vsyncpa [#allocation6], 0 }
   0x7   :  { %16 = vsyncpa [#allocation6 + $0x1], 0 }
   0x8   :  { %17 = vsyncpa [#allocation9], 0 }
   0x9   :  { %19 = vsyncpa [#allocation9 + $0x1], 0 }
   0xa   :  { %20 = vsyncpa [#allocation4], 0 }
   0xb   :  { %22 = vsyncpa [#allocation4 + $0x1], 0 }
   0xc   :  { %23 = vsyncpa [#allocation12], 0 }
   0xd   :  { %25 = vsyncpa [#allocation12 + $0x1], 0  ;;  %s1304_s18 = smov 0   ;;  %s1306_s19 = smov 0  }
   0xe   :  { %s1308_s20 = smov 0   ;;  %s1310_s21 = smov 0  }
   0xf   :  { %s1312_s22 = smov 0   ;;  %s1314_s23 = smov 0  }
  0x10   :  { %s1316_s24 = smov 0   ;;  %s1318_s25 = smov 0  }
  0x11   :  { %s1320_s26 = smov 0   ;;  %s1322_s27 = smov 0  }
  0x12   :  { %s1324_s28 = smov 0  }
  0x13 LB: > { %1664 = sst [smem:[#allocation18_spill]] %s1223_s18  ;;  %s1360_s29 = sadd.s32 4294967295, %s1263_s28   ;;  %s1263_s28 = sphi %s1324_s28, %s31_s28   ;;  %s1259_s27 = sphi %s1322_s27, %s1701_s27   ;;  %s1255_s26 = sphi %s1320_s26, %s1700_s26   ;;  %s1251_s25 = sphi %s1318_s25, %s1699_s25   ;;  %s1247_s24 = sphi %s1316_s24, %s1698_s24   ;;  %s1243_s23 = sphi %s1314_s23, %s1697_s23   ;;  %s1239_s22 = sphi %s1312_s22, %s1706_s22   ;;  %s1235_s21 = sphi %s1310_s21, %s1705_s21   ;;  %s1231_s20 = sphi %s1308_s20, %s1704_s20   ;;  %s1227_s19 = sphi %s1306_s19, %s1703_s19   ;;  %s1223_s18 = sphi %s1304_s18, %s1702_s18  }
  0x14   : > { %1665 = sst [smem:[#allocation19_spill]] %s1243_s23  ;;  %s818_s30 = sadd.s32 4294967294, %s1263_s28  }
  0x15   : > { %1666 = sst [smem:[#allocation20_spill]] %s1255_s26  ;;  %s46_s6 = sadd.s32 1, %s1255_s26 }
  0x16   : > { %1667 = sst [smem:[#allocation21_spill]] %s1259_s27  ;;  %s50_s7 = sadd.s32 1, %s1259_s27 }
  0x17   : > { %p48_p0 = scmp.ge.s32.totalorder %s46_s6, 4  ;;  %p1655_p1 = scmp.eq.s32.totalorder %s1263_s28, 0 }
  0x18   : > { %p1653_p2 = scmp.eq.s32.totalorder %s1360_s29, 0  ;;  %s89_s8 = sadd.s32 1, %s1231_s20 }
  0x19   : > { %s1708_s6 = smov (%p48_p0, %s46_s6), 0  ;;  %s1710_s7 = smov (!%p48_p0, %s50_s7), %s1259_s27 }
  0x1a   : > { %1668 = sst [smem:[#allocation22_spill]] %s1708_s6  ;;  %s83_s9 = ssub.s32 %s1255_s26, %s1708_s6 }
  0x1b   : > { %p96_p3 = scmp.ne.s32.totalorder %s1231_s20, %s1227_s19  ;;  %p52_p4 = scmp.ge.s32.totalorder %s1710_s7, 2 }
  0x1c   : > { %p102_p5 = scmp.ne.s32.totalorder %s1227_s19, %s1223_s18  ;;  %p186_p7 = scmp.eq.s32.totalorder %s1360_s29, 7 }
  0x1d   : > { %p1379_p6 = por %p96_p3, %p1655_p1  ;;  %s1712_s7 = smov (%p52_p4, %s1710_s7), 0 }
  0x1e   : > { %1670 = sst [smem:[#allocation23_spill]] %s1712_s7  ;;  %p1388_p8 = por %p102_p5, %p1653_p2 }
  0x1f   : > { %p1392_p9 = por %p186_p7, %p96_p3  ;;  %s1398_s13 = ssub.s32 %s1259_s27, %s1712_s7 }
  0x20   : > { %p192_p10 = scmp.eq.s32.totalorder %s818_s30, 7  ;;  %s84_s14 = sor.u32 %s83_s9, %s1398_s13 }
  0x21   : > { %s1672_s12 = scalar_select %p1392_p9, 1, 0 }
  0x22   : > { %p87_p12 = scmp.eq.s32.totalorder %s84_s14, 0  ;;  %p1402_p13 = por %p192_p10, %p102_p5 }
  0x23   : > { %1673 = sst [smem:[#allocation24_spill]] %s1672_s12  ;;  %p1654_p0 = scmp.lt.s32.totalorder %s1263_s28, 8 }
  0x24   : > { %s1674_s15 = scalar_select %p1402_p13, 1, 0 }
  0x25   : > { %s1408_s16 = scalar_select %p87_p12, %s1231_s20, %s89_s8  }
  0x26   : > { %1675 = sst [smem:[#allocation25_spill]] %s1674_s15  ;;  %s261_s17 = sand.u32 1, %s1263_s28  }
  0x27   : > { %s1657_s7 = sand.u32 1, %s1231_s20   ;;  %s824_s30 = sshll.u32 %s1259_s27, 2 }
  0x28   : > { %s1414_s6 = sshll.u32 %s1657_s7, 3  ;;  %s271_s18 = sadd.s32 %s1255_s26, %s824_s30 }
  0x29   : > { %s265_s4 = scalar_lea.vmem [#allocation5], %s1414_s6  ;;  %s1419_s5 = sshll.u32 %s271_s18, 7 }
  0x2a   : > { %s275_s9 = sshll.u32 %s265_s4, 4  ;;  %s1676_s1 = sld [smem:[#allocation27_spill]]  ;;  %s276_s9 = int_to_ptr.vmem [resolvable:$true] %s275_s9 }
  0x2b   : > { %p1429_p3 = pnand %p1654_p0, %p1379_p6  ;;  %p832_p4 = scmp.ge.s32.totalorder %s1263_s28, 1 }
  0x2c   : > { %p320_p5 = scmp.lt.s32.totalorder %s1263_s28, 9  ;;  %s1435_s30 = scalar_lea.sflag [#allocation6], %s261_s17 }
  0x2d   : > { %p1656_p7 = pneg %p1429_p3  ;;  %s1006_s4 = scalar_lea.vmem %s276_s9, 128 }
  0x2e   : > { %p1007_p10 = scmp.ne.s32.totalorder %s276_s9, %s1006_s4  ;;  %s1265_s18 = smov [#allocation5]  }
  0x2f   : > { %s1011_s10 = sshll.u32 %s1265_s18, 4  ;;  %s1012_s10 = int_to_ptr.vmem [resolvable:$false] %s1011_s10 }
  0x30   : > { %s273_s15 = scalar_lea.hbm %s1676_s1, %s1419_s5  ;;  %p1009_p12 = pnand %p1007_p10, %p1656_p7 }
  0x31   : > { %s1013_s12 = scalar_lea.vmem %s1012_s10, 256  ;;  %p1014_p6 = scmp.lt.s32.totalorder %s276_s9, %s1012_s10 }
  0x32   : > { %p1010_p2 = pneg %p1009_p12  ;;  %p1015_p0 = scmp.lt.s32.totalorder %s1013_s12, %s1006_s4 }
  0x34   : > { %p1016_p1 = por %p1015_p0, %p1014_p6 }
  0x36   : > { %p1017_p11 = pnand %p1016_p1, %p1010_p2 }
  0x38   : > { %1020 = shalt.err (!%p1017_p11)
}
  0x39   : > { %882 = dma.hbm_to_vmem [thread:$0]  (!%p1429_p3), %s273_s15, 128, %s276_s9, %s1435_s30  }
  0x3a   : > { %p1449_p1 = pnand %p832_p4, %p320_p5  ;;  %s59_s14 = sadd.s32 1, %s1243_s23 }
  0x3b   : > { %p66_p2 = scmp.ne.s32.totalorder %s1243_s23, %s1239_s22  ;;  %p1679_p11 = scmp.eq.s32.totalorder %s1398_s13, 0 }
  0x3c   : > { %p1681_p0 = scmp.eq.s32.totalorder %s1263_s28, 0  ;;  %p72_p12 = scmp.ne.s32.totalorder %s1239_s22, %s1235_s21 }
  0x3d   : > { %s1459_s4 = scalar_select %p1679_p11, %s1243_s23, %s59_s14  }
  0x3e   : > { %p68_p10 = por %p1681_p0, %p66_p2  ;;  %s242_s18 = sand.u32 1, %s1243_s23  }
  0x3f   : > { %1680 = sst [smem:[#allocation26_spill]] %s1459_s4  ;;  %s822_s10 = sshll.u32 %s1259_s27, 5 }
  0x40   : > { %p1682_p6 = scmp.eq.s32.totalorder %s1360_s29, 0  ;;  %s821_s15 = sshll.u32 %s242_s18, 1 }
  0x41   : > { %s252_s1 = scalar_lea.hbm %s1639_s0, %s822_s10  ;;  %p1684_p4 = scmp.lt.s32.totalorder %s1263_s28, 8 }
  0x42   : > { %p1469_p7 = por %p1682_p6, %p72_p12  ;;  %s246_s14 = scalar_lea.vmem [#allocation2], %s821_s15 }
  0x43   : > { %p1478_p5 = pnand %p1684_p4, %p68_p10  ;;  %s254_s21 = sshll.u32 %s246_s14, 4  ;;  %s255_s21 = int_to_ptr.vmem [resolvable:$true] %s254_s21 }
  0x44   : > { %s243_s27 = scalar_lea.sflag [#allocation3], %s242_s18  ;;  %s1034_s26 = scalar_lea.vmem %s255_s21, 32 }
  0x45   : > { %p1023_p2 = pneg %p1478_p5  ;;  %p1035_p11 = scmp.ne.s32.totalorder %s255_s21, %s1034_s26 }
  0x46   : > { %s1266_s4 = smov [#allocation2]  }
  0x47   : > { %p1037_p0 = pnand %p1035_p11, %p1023_p2  ;;  %s1039_s23 = sshll.u32 %s1266_s4, 4  ;;  %s1040_s23 = int_to_ptr.vmem [resolvable:$false] %s1039_s23 }
  0x48   : > { %s1041_s7 = scalar_lea.vmem %s1040_s23, 64  ;;  %p1042_p6 = scmp.lt.s32.totalorder %s255_s21, %s1040_s23 }
  0x49   : > { %p1038_p12 = pneg %p1037_p0  ;;  %p1043_p10 = scmp.lt.s32.totalorder %s1041_s7, %s1034_s26 }
  0x4b   : > { %p1044_p4 = por %p1043_p10, %p1042_p6 }
  0x4d   : > { %p1045_p13 = pnand %p1044_p4, %p1038_p12 }
  0x4f   : > { %1048 = shalt.err (!%p1045_p13)
}
  0x50   : > { %879 = dma.hbm_to_vmem [thread:$0]  (!%p1478_p5), %s252_s1, 32, %s255_s21, %s243_s27  }
  0x51   : > { %s293_s15 = scalar_lea.hbm %s1641_s2, %s1419_s5  ;;  %s286_s9 = scalar_lea.vmem [#allocation7], %s1414_s6 }
  0x52   : > { %s295_s14 = sshll.u32 %s286_s9, 4  ;;  %p1686_p11 = pneg %p1429_p3  ;;  %s296_s14 = int_to_ptr.vmem [resolvable:$true] %s295_s14 }
  0x53   : > { %s1062_s4 = scalar_lea.vmem %s296_s14, 128  ;;  %s1267_s23 = smov [#allocation7]  }
  0x54   : > { %p1063_p2 = scmp.ne.s32.totalorder %s296_s14, %s1062_s4  ;;  %s1067_s26 = sshll.u32 %s1267_s23, 4  ;;  %s1068_s26 = int_to_ptr.vmem [resolvable:$false] %s1067_s26 }
  0x55   : > { %s1069_s13 = scalar_lea.vmem %s1068_s26, 256  ;;  %p1070_p13 = scmp.lt.s32.totalorder %s296_s14, %s1068_s26 }
  0x56   : > { %p1065_p0 = pnand %p1063_p2, %p1686_p11  ;;  %p1071_p6 = scmp.lt.s32.totalorder %s1069_s13, %s1062_s4 }
  0x58   : > { %p1066_p12 = pneg %p1065_p0  ;;  %p1072_p5 = por %p1071_p6, %p1070_p13 }
  0x5a   : > { %p1073_p10 = pnand %p1072_p5, %p1066_p12 }
  0x5c   : > { %1076 = shalt.err (!%p1073_p10)
}
  0x5d   : > { %885 = dma.hbm_to_vmem [thread:$0]  (!%p1429_p3), %s293_s15, 128, %s296_s14, %s1435_s30  }
  0x5e   : > { %s313_s21 = scalar_lea.hbm %s1642_s3, %s1419_s5  ;;  %s306_s7 = scalar_lea.vmem [#allocation8], %s1414_s6 }
  0x5f   : > { %s315_s18 = sshll.u32 %s306_s7, 4  ;;  %s1687_s10 = sand.u32 1, %s1231_s20   ;;  %s316_s18 = int_to_ptr.vmem [resolvable:$true] %s315_s18 }
  0x60   : > { %s303_s9 = scalar_lea.sflag [#allocation9], %s1687_s10  ;;  %s1090_s4 = scalar_lea.vmem %s316_s18, 128 }
  0x61   : > { %p1091_p4 = scmp.ne.s32.totalorder %s316_s18, %s1090_s4  ;;  %p1688_p2 = pmov %p1686_p11 }
  0x62   : > { %s1268_s23 = smov [#allocation8]  }
  0x63   : > { %p1093_p11 = pnand %p1091_p4, %p1688_p2  ;;  %s1095_s26 = sshll.u32 %s1268_s23, 4  ;;  %s1096_s26 = int_to_ptr.vmem [resolvable:$false] %s1095_s26 }
  0x64   : > { %s1097_s13 = scalar_lea.vmem %s1096_s26, 256  ;;  %p1098_p12 = scmp.lt.s32.totalorder %s316_s18, %s1096_s26 }
  0x65   : > { %p1094_p0 = pneg %p1093_p11  ;;  %p1099_p13 = scmp.lt.s32.totalorder %s1097_s13, %s1090_s4 }
  0x67   : > { %p1100_p6 = por %p1099_p13, %p1098_p12 }
  0x69   : > { %p1101_p5 = pnand %p1100_p6, %p1094_p0 }
  0x6b   : > { %1104 = shalt.err (!%p1101_p5)
}
  0x6c   : > { %888 = dma.hbm_to_vmem [thread:$0]  (!%p1429_p3), %s313_s21, 128, %s316_s18, %s303_s9  }
  0x6d   : > { %324 = sbr.rel (%p1449_p1) target bundleno = 847 (0x34f), region = 36  ;;  %s326_s5 = sand.u32 (!%p1449_p1), 1, %s1239_s22  }
  0x6e   : > { %s1512_s6 = sshll.u32 (!%p1449_p1), %s326_s5, 1  ;;  %s327_s30 = scalar_lea.sflag (!%p1449_p1), [#allocation3], %s326_s5 }
  0x6f   : > { %s330_s15 = scalar_lea.vmem (!%p1449_p1), [#allocation2], %s1512_s6 }
  0x72   : > { %1202 = dma.done.wait (%p1469_p7), %s327_s30, 32  }
  0x73   : > { %1204 = vsyncadd (%p1469_p7), %s327_s30, 4294967264  ;;  %s335_s8 = sand.u32 1, %s1360_s29   ;;  %s1521_s14 = sand.u32 1, %s1227_s19  }
  0x74   : > { %s1524_s17 = sshll.u32 %s1521_s14, 3  ;;  %s336_s1 = scalar_lea.sflag [#allocation6], %s335_s8 }
  0x75   : > { %s339_s27 = scalar_lea.vmem [#allocation5], %s1524_s17 }
  0x76   : > { %1206 = dma.done.wait (%p1388_p8), %s336_s1, 256  }
  0x77   : > { %1208 = vsyncadd (%p1388_p8), %s336_s1, 4294967040  ;;  %s348_s12 = scalar_lea.vmem [#allocation7], %s1524_s17  ;;  %s354_s21 = scalar_lea.sflag [#allocation9], %s1521_s14 }
  0x78   : > { %s357_s29 = scalar_lea.vmem [#allocation8], %s1524_s17 }
  0x79   : > { %1210 = dma.done.wait (%p1388_p8), %s354_s21, 128  }
  0x7a   : > { %1212 = vsyncadd (%p1388_p8), %s354_s21, 4294967168  ;;  %v1269_v0 = vmov 0.0   ;;  %vm1270_vm0 = vmmov 0   ;;  %vm411_vm1 = vcmask 130048   ;;  %v407_v1 = vld [vmem:[%s348_s12] sm:$0xff]  ;;  %v406_v2 = vld [vmem:[%s339_s27] sm:$0xff] }
  0x7b   : > { %854 = vmatprep.subr.mxu0 %v1269_v0  ;;  %856 = vmatprep.mubr.msk.f32.mxu0 %vm1270_vm0, %v1269_v0  ;;  %v410_v3 = vmul.f32 0.25, %v406_v2  ;;  %v409_v4 = vld [vmem:[%s330_s15] sm:$0x3]  ;;  %v1271_v5 = vmov 0   ;;  %vm493_vm4 = vcmask 64512   ;;  %v408_v17 = vld [vmem:[%s357_s29] sm:$0xff] }
  0x7c   : > { %859 = vmatprep.subr.mxu1 %v1269_v0  ;;  %861 = vmatprep.mubr.msk.f32.mxu1 %vm1270_vm0, %v1269_v0  ;;  %vm488_vm2 = vnez %v409_v4  ;;  %s403_s7 = scalar_lea.vmem [#allocation11], %s1524_s17  ;;  %s844_s18 = sshll.u32 %s1251_s25, 2 }
  0x7d   : > { %855 = vmatpush3.xpose.msk.msra.mxu0 %vm411_vm1, %v407_v1  ;;  %v489_v6 = vsel %vm488_vm2, 16843009, %v1271_v5  ;;  %860 = vmatpush3.msra.mxu1 %v408_v17  ;;  %s1549_s10 = sadd.s32 %s1247_s24, %s844_s18  ;;  %s1690_s26 = sld [smem:[#allocation29_spill]] }
  0x7e   : > { %v490_v7 = vunpack.c.0.s8 %v489_v6  ;;  %s845_s9 = sshll.u32 %s1549_s10, 7  ;;  %s621_s6 = sshll.u32 %s403_s7, 4  ;;  %s622_s6 = int_to_ptr.vmem [resolvable:$true] %s621_s6 }
  0x7f   : > { %s589_s30 = scalar_lea.sflag [#allocation12], %s1521_s14  ;;  %s1105_s15 = scalar_lea.vmem %s622_s6, 128 }
  0x80   : > { %857 = vmatmul.mubr.msk.f32.vlgmr.msra.gmra.mxu0 %vm411_vm1, %v410_v3  ;;  %vm491_vm3 = vcmp.ne.s32.totalorder %v490_v7, 0  ;;  %p1106_p8 = scmp.ne.s32.totalorder %s622_s6, %s1105_s15  ;;  %s1272_s8 = smov [#allocation11]  }
  0x81   : > { %s1109_s25 = sshll.u32 %s1272_s8, 4  ;;  %s1110_s25 = int_to_ptr.vmem [resolvable:$false] %s1109_s25 }
  0x82   : > { %p1107_p3 = pnand %p1106_p8, %p1392_p9  ;;  %s1111_s24 = scalar_lea.vmem %s1110_s25, 256 }
  0x83   : > { %s1691_s13 = smov %s1690_s26  ;;  %s619_s5 = scalar_lea.hbm %s1690_s26, %s845_s9 }
  0x84   : > { %p1108_p7 = pneg %p1107_p3  ;;  %p1112_p1 = scmp.lt.s32.totalorder %s622_s6, %s1110_s25 }
  0x85   : > { %p1113_p10 = scmp.lt.s32.totalorder %s1111_s24, %s1105_s15 }
  0x87   : > { %p1114_p4 = por %p1113_p10, %p1112_p1 }
  0x89   : > { %p1115_p2 = pnand %p1114_p4, %p1108_p7 }
 0x140   : > { %v484_v8 = vpop.f32.mrf.mxu0 }
 0x141   : > { %v492_v9 = vsel %vm491_vm3, %v484_v8, 1e-09 }
 0x142   : > { %v858_v10 = vpop.f32.mrf.mxu0  ;;  %v494_v11 = vsel %vm493_vm4, %v492_v9, -inf }
 0x143   : > { %495 = vmax.xlane.f32.xlu0 %v494_v11 }
 0x1cc   : > { %v496_v12 = vpop.xlane.xlu0 %495 }
 0x1cd   : > { %v497_v13 = vsub.f32 %v492_v9, %v496_v12 }
 0x1cf   : > { %v498_v14 = vmul.f32 1.442695, %v497_v13 }
 0x1d1   : > { %989 = vpow2.f32 %v498_v14 }
 0x1de   : > { %v990_v15 = vpop.eup %989 }
 0x1df   : > { %v500_v16 = vsel %vm493_vm4, %v990_v15, 0.0 }
 0x1e0   : > { %501 = vadd.xlane.f32.xlu0 %v500_v16 }
 0x269   : > { %v502_v18 = vpop.xlane.xlu0 %501 }
 0x26a   : > { %991 = vrcp.f32 %v502_v18 }
 0x277   : > { %v992_v19 = vpop.eup %991 }
 0x278   : > { %v504_v20 = vmul.f32 %v992_v19, %v502_v18 }
 0x27a   : > { %v505_v21 = vsub.f32 2.0, %v504_v20 }
 0x27c   : > { %v506_v22 = vmul.f32 %v992_v19, %v505_v21 }
 0x27e   : > { %v507_v23 = vmul.f32 %v990_v15, %v506_v22 }
 0x280   : > { %862 = vmatmul.mubr.msk.f32.vlgmr.msra.gmra.mxu1 %vm493_vm4, %v507_v23  ;;  %508 = vst.msk [vmem:[%s403_s7] sm:$0xff] %vm493_vm4, %v507_v23 }
 0x281   : > { %1118 = shalt.err (!%p1115_p2)
}
 0x282   : > { %s1119_s1 = scalar_lea.hbm %s619_s5, 128  ;;  %s1123_s21 = scalar_lea.hbm %s1691_s13, 1024 }
 0x283   : > { %p1120_p11 = scmp.ne.s32.totalorder %s619_s5, %s1119_s1  ;;  %p1124_p13 = scmp.lt.s32.totalorder %s619_s5, %s1691_s13 }
 0x284   : > { %p1125_p6 = scmp.lt.s32.totalorder %s1123_s21, %s1119_s1 }
 0x285   : > { %p1121_p0 = pnand %p1120_p11, %p1392_p9 }
 0x286   : > { %p1126_p5 = por %p1125_p6, %p1124_p13 }
 0x287   : > { %p1122_p12 = pneg %p1121_p0 }
 0x289   : > { %p1127_p8 = pnand %p1126_p5, %p1122_p12 }
 0x28b   : > { %1130 = shalt.err (!%p1127_p8)
}
 0x28c   : > { %873 = dma.vmem_to_hbm [thread:$0]  (%p1392_p9), %s622_s6, 128, %s619_s5, %s589_s30  }
 0x28d   : > { %s396_s18 = scalar_lea.vmem [#allocation10], %s1524_s17  ;;  %s1692_s15 = sld [smem:[#allocation28_spill]] }
 0x28e   : > { %s605_s4 = sshll.u32 %s396_s18, 4  ;;  %s584_s25 = scalar_lea.sflag [#allocation4], %s1521_s14  ;;  %s1578_s4 = int_to_ptr.vmem [resolvable:$true] %s605_s4 }
 0x28f   : > { %s1131_s24 = scalar_lea.vmem %s1578_s4, 128  ;;  %s1273_s17 = smov [#allocation10]  }
 0x290   : > { %p1132_p3 = scmp.ne.s32.totalorder %s1578_s4, %s1131_s24  ;;  %s1135_s10 = sshll.u32 %s1273_s17, 4  ;;  %s1136_s10 = int_to_ptr.vmem [resolvable:$false] %s1135_s10 }
 0x291   : > { %p1138_p10 = scmp.lt.s32.totalorder %s1578_s4, %s1136_s10 }
 0x292   : > { %p1133_p7 = pnand %p1132_p3, %p1392_p9 }
 0x293   : > { %s1576_s8 = scalar_lea.hbm %s1692_s15, %s845_s9  ;;  %s1137_s9 = scalar_lea.vmem %s1136_s10, 256 }
 0x294   : > { %p1134_p1 = pneg %p1133_p7  ;;  %p1139_p4 = scmp.lt.s32.totalorder %s1137_s9, %s1131_s24 }
 0x296   : > { %p1140_p2 = por %p1139_p4, %p1138_p10 }
 0x298   : > { %p1141_p11 = pnand %p1140_p2, %p1134_p1 }
 0x340   : > { %v578_v24 = vpop.f32.mrf.mxu1 }
 0x341   : > { %582 = vst.msk [vmem:[%s396_s18] sm:$0xff] %vm411_vm1, %v578_v24 }
 0x342   : > { %v863_v25 = vpop.f32.mrf.mxu1 }
 0x343   : > { %1144 = shalt.err (!%p1141_p11)
}
 0x344   : > { %s1145_s5 = scalar_lea.hbm %s1576_s8, 128  ;;  %s1149_s30 = scalar_lea.hbm %s1692_s15, 1024 }
 0x345   : > { %p1146_p0 = scmp.ne.s32.totalorder %s1576_s8, %s1145_s5  ;;  %p1150_p6 = scmp.lt.s32.totalorder %s1576_s8, %s1692_s15 }
 0x346   : > { %p1151_p5 = scmp.lt.s32.totalorder %s1149_s30, %s1145_s5 }
 0x347   : > { %p1147_p12 = pnand %p1146_p0, %p1392_p9 }
 0x348   : > { %p1152_p8 = por %p1151_p5, %p1150_p6 }
 0x349   : > { %p1148_p13 = pneg %p1147_p12 }
 0x34b   : > { %p1153_p3 = pnand %p1152_p8, %p1148_p13 }
 0x34d   : > { %1156 = shalt.err (!%p1153_p3)
}
 0x34e   : > { %872 = dma.vmem_to_hbm [thread:$0]  (%p1392_p9), %s1578_s4, 128, %s1576_s8, %s584_s25  }
 0x34f PF: > { %s1693_s12 = sld [smem:[#allocation18_spill]]  ;;  %p897_p7 = scmp.ge.s32.totalorder %s1263_s28, 2 }
 0x350   : > { %s1694_s21 = sld [smem:[#allocation25_spill]] }
 0x355   : > { %s633_s29 = sand.u32 1, %s1693_s12  }
 0x356   : > { %p1695_p1 = scmp.ne.s32.totalorder %s1694_s21, 0  ;;  %s634_s7 = scalar_lea.sflag [#allocation4], %s633_s29 }
 0x358   : > { %p890_p10 = pnand %p897_p7, %p1695_p1 }
 0x35a   : > { %p891_p4 = pneg %p890_p10 }
 0x35c   : > { %1214 = dma.done.wait (%p891_p4), %s634_s7, 128  }
 0x35d   : > { %1216 = vsyncadd (%p891_p4), %s634_s7, 4294967168  ;;  %s643_s18 = scalar_lea.sflag [#allocation12], %s633_s29 }
 0x35e   : > { %1218 = dma.done.wait (%p891_p4), %s643_s18, 128  }
 0x35f   : > { %1220 = vsyncadd (%p891_p4), %s643_s18, 4294967168  ;;  %s31_s28 = sadd.s32 1, %s1263_s28   ;;  %s1696_s11 = sld [smem:[#allocation19_spill]] }
 0x360   : > { %p28_p2 = scmp.ge.s32.totalorder %s31_s28, 10   ;;  %s1697_s23 = sld [smem:[#allocation26_spill]] }
 0x361   : > { %s1698_s24 = sld [smem:[#allocation20_spill]]  ;;  %s1702_s18 = smov %s1227_s19 }
 0x362   : > { %s1699_s25 = sld [smem:[#allocation21_spill]]  ;;  %s1703_s19 = smov %s1231_s20 }
 0x363   : > { %s1700_s26 = sld [smem:[#allocation22_spill]]  ;;  %s1704_s20 = smov %s1408_s16 }
 0x364   : > { %s1701_s27 = sld [smem:[#allocation23_spill]]  ;;  %s1705_s21 = smov %s1239_s22 }
 0x365   : > { %s1706_s22 = smov %s1696_s11  ;;  %30 = sbr.rel (!%p28_p2) target bundleno = 19 (0x13), region = 135 }
 0x36a   :  { %648 = vsyncpa [#allocation3], 1 }
 0x36b   :  { %650 = vsyncpa [#allocation3 + $0x1], 1 }
 0x36c   :  { %651 = vsyncpa [#allocation6], 1 }
 0x36d   :  { %653 = vsyncpa [#allocation6 + $0x1], 1 }
 0x36e   :  { %654 = vsyncpa [#allocation9], 1 }
 0x36f   :  { %656 = vsyncpa [#allocation9 + $0x1], 1 }
 0x370   :  { %657 = vsyncpa [#allocation4], 1 }
 0x371   :  { %659 = vsyncpa [#allocation4 + $0x1], 1 }
 0x372   :  { %660 = vsyncpa [#allocation12], 1 }
 0x373   :  { %662 = vsyncpa [#allocation12 + $0x1], 1 }

</bundles_post_ra>
